<compile_context>
chip_gen: v7x
topology: tpu7x:2x2x1
jax: 0.10.0
libtpu: 0.0.40
codegen_flags: <defaults>
</compile_context>

<pallas_src>
import functools

import jax
import jax.numpy as jnp
from jax.experimental import pallas as pl
from jax.experimental.pallas import tpu as pltpu

_NEG = -1e30  # effectively -inf for masked (padded) logit columns


def _round_up(x, m):
    return (x + m - 1) // m * m


def _linear_logsoftmax_kernel(x_ref, w_ref, b_ref, o_ref, acc_ref, *,
                              c_out, c_out_pad):
    k = pl.program_id(1)

    @pl.when(k == 0)
    def _():
        acc_ref[...] = jnp.zeros_like(acc_ref)

    # x: (TM, TK) f32, w: (C_out_pad, TK) f32  ->  (TM, C_out_pad) f32 on MXU.
    acc_ref[...] += jax.lax.dot_general(
        x_ref[...], w_ref[...],
        dimension_numbers=(((1,), (1,)), ((), ())),
        preferred_element_type=jnp.float32)

    @pl.when(k == pl.num_programs(1) - 1)
    def _():
        logits = acc_ref[...] + b_ref[...]
        if c_out_pad != c_out:
            # Mask padded output columns so they don't perturb the softmax.
            col = jax.lax.broadcasted_iota(jnp.int32, logits.shape, 1)
            logits = jnp.where(col < c_out, logits, _NEG)
        m = jnp.max(logits, axis=-1, keepdims=True)
        shifted = logits - m
        lse = jnp.log(jnp.sum(jnp.exp(shifted), axis=-1, keepdims=True))
        o_ref[...] = (shifted - lse).astype(o_ref.dtype)


def mlp_linear_forward(x, weight, bias):
    """x: [N, C_in], weight: [C_out, C_in], bias: [C_out] ->
    log_softmax(x @ weight.T + bias, axis=-1) as [N, C_out]."""
    n, c_in = x.shape
    c_out, c_in_w = weight.shape
    assert c_in == c_in_w

    # ---- tile sizes --------------------------------------------------------
    tm = min(512, _round_up(n, 8))           # row tile (sublane multiple of 8)
    n_pad = _round_up(n, tm)

    if c_in % 128 == 0:                      # lane-aligned contraction tile
        tk = 512 if c_in % 512 == 0 else (256 if c_in % 256 == 0 else 128)
        tk = min(tk, c_in)
    else:
        # Un-aligned C_in: keep the whole contraction in one step (block dim ==
        # full array dim satisfies the (8,128) rule without padding x).
        # TODO(synk): pad C_in and tile if an un-aligned C_in is ever huge.
        tk = c_in
    num_k = c_in // tk

    c_out_pad = _round_up(c_out, 128)        # lane-dense output stores

    # ---- (no-op when already aligned) padding ------------------------------
    x_p = jnp.pad(x, ((0, n_pad - n), (0, 0))) if n_pad != n else x
    w_p = (jnp.pad(weight, ((0, c_out_pad - c_out), (0, 0)))
           if c_out_pad != c_out else weight)
    b_p = (jnp.pad(bias, (0, c_out_pad - c_out))
           if c_out_pad != c_out else bias).reshape(1, c_out_pad)

    # ---- VMEM budget (sized for v7x's 64 MiB) & cost estimate ---------------
    f32b = 4
    vmem_est = (2 * tm * tk * f32b            # x, double-buffered
                + 2 * c_out_pad * tk * f32b   # weight, double-buffered
                + 2 * tm * c_out_pad * f32b   # output, double-buffered
                + 2 * c_out_pad * f32b        # bias
                + tm * c_out_pad * f32b)      # accumulator scratch
    vmem_limit = int(min(64 * 1024 * 1024,
                         max(32 * 1024 * 1024, 2 * vmem_est)))

    cost = pl.CostEstimate(
        flops=2 * n * c_in * c_out,
        transcendentals=n * c_out,
        bytes_accessed=(x.size + weight.size + bias.size + n * c_out) * f32b)

    kernel = functools.partial(_linear_logsoftmax_kernel,
                               c_out=c_out, c_out_pad=c_out_pad)

    out_p = pl.pallas_call(
        kernel,
        out_shape=jax.ShapeDtypeStruct((n_pad, c_out_pad), jnp.float32),
        grid_spec=pltpu.PrefetchScalarGridSpec(
            num_scalar_prefetch=0,
            grid=(n_pad // tm, num_k),
            in_specs=[
                pl.BlockSpec((tm, tk), lambda i, k: (i, k)),          # x
                pl.BlockSpec((c_out_pad, tk), lambda i, k: (0, k)),   # weight
                pl.BlockSpec((1, c_out_pad), lambda i, k: (0, 0)),    # bias
            ],
            out_specs=pl.BlockSpec((tm, c_out_pad), lambda i, k: (i, 0)),
            scratch_shapes=[pltpu.VMEM((tm, c_out_pad), jnp.float32)],
        ),
        compiler_params=pltpu.CompilerParams(
            dimension_semantics=("parallel", "arbitrary"),
            vmem_limit_bytes=vmem_limit),
        cost_estimate=cost,
    )(x_p, w_p, b_p)

    if n_pad != n or c_out_pad != c_out:
        out_p = out_p[:n, :c_out]
    return out_p


def _reference(x, weight, bias):
    logits = jax.lax.dot_general(
        x, weight, dimension_numbers=(((1,), (1,)), ((), ())),
        precision=jax.lax.Precision.HIGHEST) + bias
    return jax.nn.log_softmax(logits, axis=-1)


if __name__ == "__main__":
    key = jax.random.PRNGKey(0)
    k_x, k_w, k_b, k_x2, k_w2, k_b2 = jax.random.split(key, 6)

    # ---- test 1: toy shape matching the original module demo ---------------
    n, c_in, c_out = 8, 32, 16
    bound = 1.0 / (c_in ** 0.5)   # torch.nn.Linear default init range
    weight = jax.random.uniform(k_w, (c_out, c_in), jnp.float32, -bound, bound)
    bias = jax.random.uniform(k_b, (c_out,), jnp.float32, -bound, bound)
    x = jax.random.normal(k_x, (n, c_in), jnp.float32)

    out = jax.block_until_ready(mlp_linear_forward(x, weight, bias))
    ref = _reference(x, weight, bias)
    assert out.shape == ref.shape
    assert jnp.allclose(out, ref, atol=1e-4, rtol=1e-4), "mismatch vs reference (test 1)"

    # ---- test 2: exercises row padding + multi-step K reduction -------------
    n2, c_in2, c_out2 = 20, 384, 128
    bound2 = 1.0 / (c_in2 ** 0.5)
    weight2 = jax.random.uniform(k_w2, (c_out2, c_in2), jnp.float32, -bound2, bound2)
    bias2 = jax.random.uniform(k_b2, (c_out2,), jnp.float32, -bound2, bound2)
    x2 = jax.random.normal(k_x2, (n2, c_in2), jnp.float32)

    out2 = jax.block_until_ready(mlp_linear_forward(x2, weight2, bias2))
    ref2 = _reference(x2, weight2, bias2)
    assert out2.shape == ref2.shape
    assert jnp.allclose(out2, ref2, atol=1e-4, rtol=1e-4), "mismatch vs reference (test 2)"

    print("KERNEL_OK")
</pallas_src>

<mosaic_0001>
module attributes {stable_mosaic.version = 11 : i64} {
  func.func @_linear_logsoftmax_kernel(%arg0: i32, %arg1: i32, %arg2: memref<8x32xf32, #tpu.memory_space<vmem>>, %arg3: memref<128x32xf32, #tpu.memory_space<vmem>>, %arg4: memref<1x128xf32, #tpu.memory_space<vmem>>, %arg5: memref<8x128xf32, #tpu.memory_space<vmem>>, %arg6: memref<8x128xf32, #tpu.memory_space<vmem>>) attributes {dimension_semantics = [#tpu.dimension_semantics<parallel>, #tpu.dimension_semantics<arbitrary>], iteration_bounds = array<i64: 1, 1>, scalar_prefetch = 0 : i64, scratch_operands = 1 : i64, tpu.core_type = #tpu.core_type<tc>, window_params = [{transform_indices = @transform_0, window_bounds = array<i64: 8, 32>}, {transform_indices = @transform_1, window_bounds = array<i64: 128, 32>}, {pipeline_mode = #tpu.pipeline_mode<synchronous>, transform_indices = @transform_2, window_bounds = array<i64: 1, 128>}, {transform_indices = @transform_3, window_bounds = array<i64: 8, 128>}]} {
    %c0_i32 = arith.constant 0 : i32
    %0 = arith.cmpi eq, %arg1, %c0_i32 : i32
    %1 = arith.extui %0 : i1 to i32
    %c0_i32_0 = arith.constant 0 : i32
    %2 = arith.cmpi ne, %1, %c0_i32_0 : i32
    scf.if %2 {
      %cst_10 = arith.constant 0.000000e+00 : f32
      %12 = vector.broadcast %cst_10 : f32 to vector<8x128xf32>
      %c0_11 = arith.constant 0 : index
      %c0_12 = arith.constant 0 : index
      %13 = vector.load %arg6[%c0_11, %c0_12] : memref<8x128xf32, #tpu.memory_space<vmem>>, vector<8x128xf32>
      tpu.vector_store %arg6[%c0_11, %c0_12], %12 {strides = array<i32>} : memref<8x128xf32, #tpu.memory_space<vmem>>, vector<8x128xf32>,
    } else {
    }
    %c0 = arith.constant 0 : index
    %c0_1 = arith.constant 0 : index
    %3 = vector.load %arg6[%c0, %c0_1] : memref<8x128xf32, #tpu.memory_space<vmem>>, vector<8x128xf32>
    %c0_2 = arith.constant 0 : index
    %c0_3 = arith.constant 0 : index
    %4 = vector.load %arg2[%c0_2, %c0_3] : memref<8x32xf32, #tpu.memory_space<vmem>>, vector<8x32xf32>
    %c0_4 = arith.constant 0 : index
    %c0_5 = arith.constant 0 : index
    %5 = vector.load %arg3[%c0_4, %c0_5] : memref<128x32xf32, #tpu.memory_space<vmem>>, vector<128x32xf32>
    %cst = arith.constant dense<0.000000e+00> : vector<8x128xf32>
    %6 = tpu.matmul %4, %5, %cst {dimension_numbers = #tpu.dot_dimension_numbers<[1], [1], [0], [0], [0, 0, 1, 0], [], []>} : vector<8x32xf32>, vector<128x32xf32>, vector<8x128xf32> -> vector<8x128xf32>
    %7 = arith.addf %3, %6 : vector<8x128xf32>
    %c0_6 = arith.constant 0 : index
    %c0_7 = arith.constant 0 : index
    %8 = vector.load %arg6[%c0_6, %c0_7] : memref<8x128xf32, #tpu.memory_space<vmem>>, vector<8x128xf32>
    tpu.vector_store %arg6[%c0_6, %c0_7], %7 {strides = array<i32>} : memref<8x128xf32, #tpu.memory_space<vmem>>, vector<8x128xf32>,
    %c0_i32_8 = arith.constant 0 : i32
    %9 = arith.cmpi eq, %arg1, %c0_i32_8 : i32
    %10 = arith.extui %9 : i1 to i32
    %c0_i32_9 = arith.constant 0 : i32
    %11 = arith.cmpi ne, %10, %c0_i32_9 : i32
    scf.if %11 {
      %c0_10 = arith.constant 0 : index
      %c0_11 = arith.constant 0 : index
      %12 = vector.load %arg6[%c0_10, %c0_11] : memref<8x128xf32, #tpu.memory_space<vmem>>, vector<8x128xf32>
      %c0_12 = arith.constant 0 : index
      %c0_13 = arith.constant 0 : index
      %13 = vector.load %arg4[%c0_12, %c0_13] : memref<1x128xf32, #tpu.memory_space<vmem>>, vector<1x128xf32>
      %14 = vector.broadcast %13 : vector<1x128xf32> to vector<8x128xf32>
      %15 = arith.addf %12, %14 : vector<8x128xf32>
      %16 = tpu.iota {dimensions = array<i32: 1>} : vector<8x128xi32>
      %c16_i32 = arith.constant 16 : i32
      %17 = vector.broadcast %c16_i32 : i32 to vector<8x128xi32>
      %18 = arith.cmpi slt, %16, %17 : vector<8x128xi32>
      %cst_14 = arith.constant -1.000000e+30 : f32
      %19 = vector.broadcast %cst_14 : f32 to vector<8x128xf32>
      %20 = arith.select %18, %15, %19 : vector<8x128xi1>, vector<8x128xf32>
      %cst_15 = arith.constant dense<0xFF800000> : vector<8xf32>
      %21 = vector.multi_reduction <maximumf>, %20, %cst_15 [1] : vector<8x128xf32> to vector<8xf32>
      %22 = vector.shape_cast %21 : vector<8xf32> to vector<8x1xf32>
      %23 = vector.broadcast %22 : vector<8x1xf32> to vector<8x128xf32>
      %24 = arith.subf %20, %23 : vector<8x128xf32>
      %25 = math.exp %24 : vector<8x128xf32>
      %cst_16 = arith.constant dense<0.000000e+00> : vector<8xf32>
      %26 = vector.multi_reduction <add>, %25, %cst_16 [1] : vector<8x128xf32> to vector<8xf32>
      %27 = vector.shape_cast %26 : vector<8xf32> to vector<8x1xf32>
      %28 = math.log %27 : vector<8x1xf32>
      %29 = vector.broadcast %28 : vector<8x1xf32> to vector<8x128xf32>
      %30 = arith.subf %24, %29 : vector<8x128xf32>
      %c0_17 = arith.constant 0 : index
      %c0_18 = arith.constant 0 : index
      %31 = vector.load %arg5[%c0_17, %c0_18] : memref<8x128xf32, #tpu.memory_space<vmem>>, vector<8x128xf32>
      tpu.vector_store %arg5[%c0_17, %c0_18], %30 {strides = array<i32>} : memref<8x128xf32, #tpu.memory_space<vmem>>, vector<8x128xf32>,
    } else {
    }
    return
  }
  func.func @transform_0(%arg0: i32, %arg1: i32) -> (i32, i32) {
    %c0_i32 = arith.constant 0 : i32
    return %arg0, %arg1 : i32, i32
  }
  func.func @transform_1(%arg0: i32, %arg1: i32) -> (i32, i32) {
    %c0_i32 = arith.constant 0 : i32
    %c0_i32_0 = arith.constant 0 : i32
    return %c0_i32, %arg1 : i32, i32
  }
  func.func @transform_2(%arg0: i32, %arg1: i32) -> (i32, i32) {
    %c0_i32 = arith.constant 0 : i32
    %c0_i32_0 = arith.constant 0 : i32
    %c0_i32_1 = arith.constant 0 : i32
    return %c0_i32, %c0_i32_0 : i32, i32
  }
  func.func @transform_3(%arg0: i32, %arg1: i32) -> (i32, i32) {
    %c0_i32 = arith.constant 0 : i32
    %c0_i32_0 = arith.constant 0 : i32
    return %arg0, %c0_i32 : i32, i32
  }
}

</mosaic_0001>

<bundles_post_ra>
// kernel: tpu_custom_call.1
= control target key start
LH: loop header
LB: loop body
LE: loop exit
PB: predicated region body
PF: predicated region fallthrough
CT: control target
= control target key end

     0   :  { %vm38_vm0 = vcmask 261120   ;;  %v337_v2 = vmov 0.0|0.0   ;;  %vm338_vm2 = vmmov 0   ;;  %v339_v5 = vmov 0.0   ;;  %s450_s0 = inlined_call_operand.vmem [shape: f32[8,32], index: 0, kind: input, shape index: {}]   ;;  %s451_s1 = inlined_call_operand.vmem [shape: f32[128,32], index: 1, kind: input, shape index: {}]   ;;  %s452_s2 = inlined_call_operand.vmem [shape: f32[1,128], index: 2, kind: input, shape index: {}]   ;;  %s453_s3 = inlined_call_operand.hbm [shape: f32[8,128], index: 3, kind: output, shape index: {}]  }
   0x1   :  { %v22_v0 = vld [vmem:[%s451_s1] sm:$0xff]  ;;  %v23_v1 = vld [vmem:[%s451_s1 + $0x8] sm:$0xff]  ;;  %273 = vmatprep.subr.bf16.mxu0 %v337_v2  ;;  %vm369_vm1 = vmpackc.low %vm38_vm0, %vm38_vm0  ;;  %270 = vmatprep.mubr.msk.f32.mxu0 %vm338_vm2, %v339_v5 }
   0x2   :  { %v274_v3 = vpack.c.bf16 %v23_v1, %v22_v0  ;;  %v24_v6 = vld [vmem:[%s451_s1 + $0x10] sm:$0xff]  ;;  %v25_v7 = vld [vmem:[%s451_s1 + $0x18] sm:$0xff] }
   0x4   :  { %276 = vmatpush3.bf16.xpose.msk.msra.mxu0 %vm369_vm1, %v274_v3 }
   0x5   :  { %277 = vmatprep.subr.bf16.mxu0 %v337_v2 }
   0x6   :  { %8 = vsyncpa [#allocation4], 0  ;;  %v278_v8 = vpack.c.bf16 %v25_v7, %v24_v6  ;;  %v26_v9 = vld [vmem:[%s451_s1 + $0x20] sm:$0xff]  ;;  %v27_v10 = vld [vmem:[%s451_s1 + $0x28] sm:$0xff]  ;;  %v174_v28 = vlaneseq }
   0x7   :  { %v282_v11 = vpack.c.bf16 %v27_v10, %v26_v9  ;;  %v28_v12 = vld [vmem:[%s451_s1 + $0x30] sm:$0xff]  ;;  %v29_v13 = vld [vmem:[%s451_s1 + $0x38] sm:$0xff]  ;;  %v30_v15 = vld [vmem:[%s451_s1 + $0x40] sm:$0xff] }
   0x8   :  { %v286_v14 = vpack.c.bf16 %v29_v13, %v28_v12  ;;  %v31_v16 = vld [vmem:[%s451_s1 + $0x48] sm:$0xff]  ;;  %v32_v18 = vld [vmem:[%s451_s1 + $0x50] sm:$0xff]  ;;  %v33_v19 = vld [vmem:[%s451_s1 + $0x58] sm:$0xff]  ;;  %v175_v29 = vand.u32 127, %v174_v28 }
   0x9   :  { %v290_v17 = vpack.c.bf16 %v31_v16, %v30_v15  ;;  %v294_v20 = vpack.c.bf16 %v33_v19, %v32_v18  ;;  %v34_v21 = vld [vmem:[%s451_s1 + $0x60] sm:$0xff]  ;;  %v35_v22 = vld [vmem:[%s451_s1 + $0x68] sm:$0xff]  ;;  %v36_v24 = vld [vmem:[%s451_s1 + $0x70] sm:$0xff] }
   0xa   :  { %v298_v23 = vpack.c.bf16 %v35_v22, %v34_v21  ;;  %v37_v25 = vld [vmem:[%s451_s1 + $0x78] sm:$0xff]  ;;  %v21_v27 = vld [vmem:[%s450_s0] sm:$0xff]  ;;  %vm176_vm3 = vcmp.lt.s32.totalorder %v175_v29, 16  ;;  %s340_s0 = smov [#allocation3]  }
   0xb   :  { %v302_v26 = vpack.c.bf16 %v37_v25, %v36_v24  ;;  %v220_v30 = vld [vmem:[%s452_s2] ss:$0 sm:$0xff]  ;;  %s195_s1 = sshll.u32 %s340_s0, 4  ;;  %s196_s1 = int_to_ptr.vmem [resolvable:$true] %s195_s1 }
   0xc   :  { %280 = vmatpush3.bf16.xpose.msk.msra.mxu0 %vm369_vm1, %v278_v8  ;;  %s313_s2 = scalar_lea.vmem %s196_s1, 128  ;;  %p318_p1 = scmp.lt.s32.totalorder %s196_s1, %s196_s1 }
   0xd   :  { %281 = vmatprep.subr.bf16.mxu0 %v337_v2  ;;  %p314_p0 = scmp.ne.s32.totalorder %s196_s1, %s313_s2  ;;  %p319_p2 = scmp.lt.s32.totalorder %s313_s2, %s313_s2 }
   0xf   :  { %p320_p3 = por %p319_p2, %p318_p1 }
  0x11   :  { %p321_p4 = pnand %p320_p3, %p314_p0 }
  0x14   :  { %284 = vmatpush3.bf16.xpose.msk.msra.mxu0 %vm369_vm1, %v282_v11 }
  0x15   :  { %285 = vmatprep.subr.bf16.mxu0 %v337_v2 }
  0x1c   :  { %288 = vmatpush3.bf16.xpose.msk.msra.mxu0 %vm369_vm1, %v286_v14 }
  0x1d   :  { %289 = vmatprep.subr.bf16.mxu0 %v337_v2 }
  0x24   :  { %292 = vmatpush3.bf16.xpose.msk.msra.mxu0 %vm369_vm1, %v290_v17 }
  0x25   :  { %293 = vmatprep.subr.bf16.mxu0 %v337_v2 }
  0x2c   :  { %296 = vmatpush3.bf16.xpose.msk.msra.mxu0 %vm369_vm1, %v294_v20 }
  0x2d   :  { %297 = vmatprep.subr.bf16.mxu0 %v337_v2 }
  0x34   :  { %300 = vmatpush3.bf16.xpose.msk.msra.mxu0 %vm369_vm1, %v298_v23 }
  0x35   :  { %301 = vmatprep.subr.bf16.mxu0 %v337_v2 }
  0x3c   :  { %304 = vmatpush3.bf16.xpose.msk.msra.mxu0 %vm369_vm1, %v302_v26 }
  0x43   :  { %271 = vmatmul.mubr.msk.f32.vlgmr.msra.gmra.mrb[0].mxu0 %vm38_vm0, %v21_v27 }
 0x116   :  { %v156_v31 = vpop.f32.mrb[0].mxu0 }
 0x117   :  { %v173_v32 = vadd.f32 %v220_v30, %v156_v31  ;;  %v272_v33 = vpop.f32.mrb[1].mxu0 }
 0x119   :  { %v177_v34 = vsel %vm176_vm3, %v173_v32, -1e+30 }
 0x11a   :  { %178 = vmax.xlane.f32.xlu0 %v177_v34 }
 0x1a7   :  { %v179_v35 = vpop.xlane.xlu0 %178 }
 0x1a8   :  { %v180_v36 = vsub.f32 %v177_v34, %v179_v35 }
 0x1aa   :  { %v181_v37 = vmul.f32 1.442695, %v180_v36 }
 0x1ac   :  { %309 = vpow2.f32 %v181_v37 }
 0x1b6   :  { %v310_v38 = vpop.eup %309 }
 0x1b7   :  { %183 = vadd.xlane.f32.xlu0 %v310_v38 }
 0x244   :  { %v184_v39 = vpop.xlane.xlu0 %183 }
 0x245   :  { %311 = vlog2.f32 %v184_v39 }
 0x24f   :  { %v312_v40 = vpop.eup %311 }
 0x250   :  { %v186_v41 = vmul.f32 0.6931472, %v312_v40 }
 0x252   :  { %v187_v42 = vsub.f32 %v180_v36, %v186_v41 }
 0x254   :  { %188 = vst [vmem:[#allocation3] sm:$0xff] %v187_v42 }
 0x255   :  { %324 = shalt.err (!%p321_p4)
}
 0x256   :  { %s325_s23 = scalar_lea.hbm %s453_s3, 128 }
 0x257   :  { %p326_p5 = scmp.ne.s32.totalorder %s453_s3, %s325_s23  ;;  %p329_p6 = scmp.lt.u32.totalorder %s325_s23, %s453_s3 }
 0x259   :  { %p331_p7 = pnand %p329_p6, %p326_p5 }
 0x25b   :  { %334 = shalt.err (!%p331_p7)
}
 0x25c   :  { %198 = dma.vmem_to_hbm [thread:$0]  %s196_s1, 128, %s453_s3, [#allocation4]  }
 0x25d   :  { %335 = dma.done.wait [#allocation4], 128  }
 0x25e   :  { %336 = vsyncadd [#allocation4], 4294967168 }
 0x25f   :  { %202 = vsyncpa [#allocation4], 1 }

</bundles_post_ra>
